<compile_context>
chip_gen: v5e
topology: v5e:2x2
jax: 0.10.0
libtpu: 0.0.40
codegen_flags: <defaults>
</compile_context>

<pallas_src>
import functools

import jax
import jax.numpy as jnp
from jax.experimental import pallas as pl
from jax.experimental.pallas import tpu as pltpu

LANE = 128
NUM_LAYERS = 4
NEG_INF = jnp.float32(-1e30)


def _round_up(v, m):
    return ((v + m - 1) // m) * m


def _pad2(a, rows, cols):
    r, c = a.shape
    return jnp.zeros((rows, cols), a.dtype).at[:r, :c].set(a)


# -----------------------------------------------------------------------------
# Fused kernel.  grid = (layer, A-row-tile).  Per layer:
#   t == 0 : Z = H_prev @ W_l   (bf16, resident in scratch)
#   each t : H[rows_t] = tanh(A[rows_t, :] @ Z + b_l)        (A tile streamed)
# last (layer, tile): max/mean pool + final Linear, lane-dense output writes.
# -----------------------------------------------------------------------------
def _gcn_streamed_kernel(a_ref, x_ref, w0_ref, wh_ref, b_ref, msc_ref, neg_ref,
                         wout_ref, bout_ref, out_ref, hidden_ref,
                         z_buf, h_buf, b_sel, *, tm, e_pad, g_pad):
    bf16 = jnp.bfloat16
    l = pl.program_id(0)                 # layer index (0..3), sequential
    t = pl.program_id(1)                 # A_hat row-tile index, sequential
    nt = pl.num_programs(1)

    # ---- once per layer (first row tile): Z = H_prev @ W_l, select bias ----
    @pl.when(t == 0)
    def _compute_z():
        @pl.when(l == 0)
        def _():
            z = jnp.dot(x_ref[...], w0_ref[...], preferred_element_type=jnp.float32)
            z_buf[...] = z.astype(bf16)          # bf16 residency halves Z footprint
            b_sel[...] = b_ref[0:1, :]
        for k in range(1, NUM_LAYERS):
            @pl.when(l == k)
            def _(k=k):                           # static weight/bias index per layer
                z = jnp.dot(h_buf[...].astype(bf16), wh_ref[k - 1],
                            preferred_element_type=jnp.float32)
                z_buf[...] = z.astype(bf16)
                b_sel[...] = b_ref[k:k + 1, :]

    # ---- aggregation for this streamed row tile of A_hat ----
    acc = jnp.dot(a_ref[...], z_buf[...], preferred_element_type=jnp.float32)  # (tm, e_pad) f32
    row0 = pl.multiple_of(t * tm, tm)
    h_buf[pl.ds(row0, tm), :] = jnp.tanh(acc + b_sel[...])

    # ---- after the last tile of the last layer: pooling + final Linear ----
    @pl.when(jnp.logical_and(l == NUM_LAYERS - 1, t == nt - 1))
    def _finalize():
        h = h_buf[...]                                                     # (n_pad, e_pad) f32
        # mean pool: mask rows pre-scaled by 1/count
        gap = jnp.dot(msc_ref[...], h, preferred_element_type=jnp.float32)  # (g_pad, e_pad)
        # max pool: per-graph loop (live set stays (n_pad, e_pad); no G*N*E slab)
        neg = neg_ref[...]                                                 # (n_pad, g_pad): 0 / -1e30
        rows = []
        for gi in range(g_pad):
            rows.append(jnp.max(h + neg[:, gi:gi + 1], axis=0, keepdims=True))
        gmp = jnp.concatenate(rows, axis=0)                                # (g_pad, e_pad)

        # lane-dense hidden: [gmp | gap], each half 128 lanes (aligned stores)
        hidden_ref[:, :e_pad] = gmp
        hidden_ref[:, e_pad:] = gap

        # final Linear as VPU multiply + lane reduction (no 1-column MXU matmul)
        contrib = gmp * wout_ref[0:1, :] + gap * wout_ref[1:2, :]
        res = jnp.sum(contrib, axis=1, keepdims=True) + bout_ref[0]        # (g_pad, 1)
        out_ref[...] = jnp.broadcast_to(res, (g_pad, LANE))                # lane-dense; col 0 valid


def _gcn_pallas(a_pad, x_pad, w0_pad, wh_pad, b_pad, msc, neg, wout2, b_out,
                *, tm, e_pad, g_pad):
    n_pad = a_pad.shape[0]
    f_pad = x_pad.shape[1]
    nl = wh_pad.shape[0]
    nt = n_pad // tm

    kernel = functools.partial(_gcn_streamed_kernel, tm=tm, e_pad=e_pad, g_pad=g_pad)

    # VMEM budget: streamed A tile (double-buffered) + resident X/weights/masks
    # + Z/H scratch + outputs, with headroom.
    est = (2 * tm * n_pad * 2                      # A row tile, 2 buffers, bf16
           + 2 * n_pad * f_pad * 2                 # X, bf16
           + 2 * (f_pad + nl * e_pad) * e_pad * 2  # W0 + W1..W3, bf16
           + n_pad * e_pad * (2 + 4)               # z_buf bf16 + h_buf f32
           + 2 * (g_pad * n_pad + n_pad * g_pad) * 4   # pooling masks, f32
           + 2 * (g_pad * (LANE + 2 * e_pad)) * 4      # outputs, f32
           + (1 << 20))
    vmem_limit = max(32 * 1024 * 1024, min(int(est * 1.5), 100 * 1024 * 1024))

    return pl.pallas_call(
        kernel,
        out_shape=(
            jax.ShapeDtypeStruct((g_pad, LANE), jnp.float32),        # out (col 0 valid)
            jax.ShapeDtypeStruct((g_pad, 2 * e_pad), jnp.float32),   # hidden (gmp | gap)
        ),
        grid=(NUM_LAYERS, nt),
        in_specs=[
            pl.BlockSpec((tm, n_pad), lambda l, t: (t, 0)),          # A_hat row tile (streamed, bf16)
            pl.BlockSpec((n_pad, f_pad), lambda l, t: (0, 0)),       # X (resident, bf16)
            pl.BlockSpec((f_pad, e_pad), lambda l, t: (0, 0)),       # W0 (bf16)
            pl.BlockSpec((nl, e_pad, e_pad), lambda l, t: (0, 0, 0)),  # W1..W3 stacked (bf16)
            pl.BlockSpec((NUM_LAYERS, e_pad), lambda l, t: (0, 0)),  # b0..b3 stacked (f32)
            pl.BlockSpec((g_pad, n_pad), lambda l, t: (0, 0)),       # mean-pool mask (scaled, f32)
            pl.BlockSpec((n_pad, g_pad), lambda l, t: (0, 0)),       # max-pool additive mask (f32)
            pl.BlockSpec((2, e_pad), lambda l, t: (0, 0)),           # w_out split [gmp; gap] (f32)
            pl.BlockSpec(memory_space=pltpu.MemorySpace.SMEM),       # b_out scalar
        ],
        out_specs=(
            pl.BlockSpec((g_pad, LANE), lambda l, t: (0, 0)),
            pl.BlockSpec((g_pad, 2 * e_pad), lambda l, t: (0, 0)),
        ),
        scratch_shapes=[
            pltpu.VMEM((n_pad, e_pad), jnp.bfloat16),   # Z = H @ W  (bf16 resident)
            pltpu.VMEM((n_pad, e_pad), jnp.float32),    # H activations (carried across layers)
            pltpu.VMEM((1, e_pad), jnp.float32),        # bias of the current layer
        ],
        compiler_params=pltpu.CompilerParams(
            # Both axes are sequential: Z is built at t==0 and H is carried across
            # layers in scratch.
            # TODO(synk): to use both v7x TensorCores, split each layer's aggregation
            # into its own pallas_call with a 'parallel' row-tile axis.
            dimension_semantics=("arbitrary", "arbitrary"),
            vmem_limit_bytes=vmem_limit,
        ),
    )(a_pad, x_pad, w0_pad, wh_pad, b_pad, msc, neg, wout2, b_out)


@functools.partial(jax.jit, static_argnames=("embedding_size",))
def gcn_forward(x, a_hat, mask, params, embedding_size):
    """Pads operands to lane/tile-aligned shapes (exact: zero padding), casts MXU
    operands to bf16 and calls the single fused, A-streaming Pallas kernel."""
    bf16 = jnp.bfloat16
    n, f = x.shape
    g = mask.shape[0]
    e = embedding_size
    f_pad = _round_up(max(f, LANE), LANE)
    e_pad = _round_up(max(e, LANE), LANE)
    # A_hat row tile: 256 fills the 256-wide v6e/v7x MXU (use 128 on v5e).
    tm = 256 if n >= 256 else _round_up(n, 8)
    n_pad = _round_up(n, tm)
    g_pad = _round_up(g, 8)

    a_pad = _pad2(a_hat, n_pad, n_pad).astype(bf16)
    x_pad = _pad2(x, n_pad, f_pad).astype(bf16)
    w0_pad = _pad2(params["w0"], f_pad, e_pad).astype(bf16)
    wh_pad = jnp.stack(
        [_pad2(params[f"w{i}"], e_pad, e_pad) for i in (1, 2, 3)]).astype(bf16)
    b_pad = jnp.stack(
        [jnp.zeros((e_pad,), jnp.float32).at[:e].set(params[f"b{i}"])
         for i in range(NUM_LAYERS)])

    counts = mask.sum(axis=1)
    inv = jnp.where(counts > 0, 1.0 / counts, 0.0)           # guard empty graph slots
    msc = jnp.zeros((g_pad, n_pad), jnp.float32).at[:g, :n].set(mask * inv[:, None])

    # Additive max-pool mask: 0 for member nodes, -1e30 otherwise.
    # Padded / empty graph columns use 0 everywhere so gmp stays finite (rows are
    # sliced off below); padded node rows are excluded from real graphs.
    neg_real = jnp.where(mask.T > 0, 0.0, NEG_INF)            # (n, g)
    neg_real = jnp.where((counts > 0)[None, :], neg_real, 0.0)
    neg = jnp.full((n_pad, g_pad), NEG_INF, jnp.float32)
    neg = neg.at[:, g:].set(0.0)
    neg = neg.at[:n, :g].set(neg_real)

    w_out = params["w_out"]                                   # (2E, 1)
    wout2 = jnp.zeros((2, e_pad), jnp.float32)
    wout2 = wout2.at[0, :e].set(w_out[:e, 0])                 # gmp part
    wout2 = wout2.at[1, :e].set(w_out[e:, 0])                 # gap part
    b_out = params["b_out"].astype(jnp.float32)               # (1,) scalar -> SMEM

    out_pad, hidden_pad = _gcn_pallas(a_pad, x_pad, w0_pad, wh_pad, b_pad,
                                      msc, neg, wout2, b_out,
                                      tm=tm, e_pad=e_pad, g_pad=g_pad)
    out = out_pad[:g, :1]
    hidden = jnp.concatenate(
        [hidden_pad[:g, :e], hidden_pad[:g, e_pad:e_pad + e]], axis=1)
    return out, hidden


# -----------------------------------------------------------------------------
# Glue: dense normalized adjacency (GCNConv's gcn_norm), params, references.
# TODO(synk): the edge_index/batch_index scatter into the dense A_hat / pooling
# mask is done with plain JAX scatter on the host (no Pallas scatter kernel).
# -----------------------------------------------------------------------------
def dense_norm_adj(edge_index, num_nodes, improved, edge_weight=None):
    src, dst = edge_index[0], edge_index[1]
    if edge_weight is None:
        edge_weight = jnp.ones(src.shape[0], dtype=jnp.float32)
    fill = 2.0 if improved else 1.0
    a = jnp.zeros((num_nodes, num_nodes), jnp.float32)
    a = a.at[dst, src].add(edge_weight)                    # A[target, source]
    a = a + fill * jnp.eye(num_nodes, dtype=jnp.float32)   # add self loops
    deg = a.sum(axis=1)
    dinv = jnp.where(deg > 0, 1.0 / jnp.sqrt(deg), 0.0)
    return a * dinv[:, None] * dinv[None, :]


def init_params(key, num_features, embedding_size):
    def glorot(k, shape):
        lim = jnp.sqrt(6.0 / (shape[0] + shape[1]))
        return jax.random.uniform(k, shape, jnp.float32, -lim, lim)

    ks = jax.random.split(key, 6)
    return {
        "w0": glorot(ks[0], (num_features, embedding_size)),
        "b0": jnp.zeros((embedding_size,), jnp.float32),
        "w1": glorot(ks[1], (embedding_size, embedding_size)),
        "b1": jnp.zeros((embedding_size,), jnp.float32),
        "w2": glorot(ks[2], (embedding_size, embedding_size)),
        "b2": jnp.zeros((embedding_size,), jnp.float32),
        "w3": glorot(ks[3], (embedding_size, embedding_size)),
        "b3": jnp.zeros((embedding_size,), jnp.float32),
        "w_out": glorot(ks[4], (2 * embedding_size, 1)),
        "b_out": jax.random.uniform(ks[5], (1,), jnp.float32, -0.1, 0.1),
    }


def gcn_forward_ref_f32(x, a_hat, mask, params):
    """Pure-JAX f32 reference (original module semantics)."""
    h = x
    for i in range(4):
        h = jnp.tanh(a_hat @ (h @ params[f"w{i}"]) + params[f"b{i}"][None, :])
    counts = mask.sum(axis=1, keepdims=True)
    gap = (mask @ h) / counts
    gmp = jnp.max(jnp.where(mask[:, :, None] > 0, h[None, :, :], -1e30), axis=1)
    hidden = jnp.concatenate([gmp, gap], axis=1)
    out = hidden @ params["w_out"] + params["b_out"][None, :]
    return out, hidden


def gcn_forward_ref_mixed(x, a_hat, mask, params):
    """Pure-JAX reference mirroring the kernel's bf16-matmul / f32-accumulate dtypes."""
    bf = jnp.bfloat16
    a = a_hat.astype(bf)
    counts = mask.sum(axis=1, keepdims=True)
    msc = mask / counts
    h = x
    for i in range(4):
        z = jnp.dot(h.astype(bf), params[f"w{i}"].astype(bf),
                    preferred_element_type=jnp.float32).astype(bf)
        z = jnp.dot(a, z, preferred_element_type=jnp.float32)
        h = jnp.tanh(z + params[f"b{i}"][None, :])
    gap = jnp.dot(msc, h, preferred_element_type=jnp.float32)
    gmp = jnp.max(jnp.where(mask[:, :, None] > 0, h[None, :, :], -1e30), axis=1)
    hidden = jnp.concatenate([gmp, gap], axis=1)
    e = h.shape[1]
    w_out = params["w_out"]
    out = jnp.sum(gmp * w_out[:e, 0][None, :] + gap * w_out[e:, 0][None, :],
                  axis=1, keepdims=True) + params["b_out"][None, :]
    return out, hidden


if __name__ == "__main__":
    # Small deterministic problem: 2 graphs x 8 nodes (ring graphs), 4 features, 32 hidden.
    num_features = 4
    embedding_size = 32
    nodes_per_graph = 8
    num_graphs = 2
    num_nodes = num_graphs * nodes_per_graph
    improved = True

    # ring edges (both directions) inside each graph
    src, dst = [], []
    for g in range(num_graphs):
        off = g * nodes_per_graph
        for i in range(nodes_per_graph):
            j = (i + 1) % nodes_per_graph
            src += [off + i, off + j]
            dst += [off + j, off + i]
    edge_index = jnp.array([src, dst], dtype=jnp.int32)            # (2, 32)
    batch_index = jnp.array([g for g in range(num_graphs)
                             for _ in range(nodes_per_graph)], dtype=jnp.int32)

    key = jax.random.PRNGKey(0)
    kx, kp = jax.random.split(key)
    x = jax.random.normal(kx, (num_nodes, num_features), jnp.float32)
    params = init_params(kp, num_features, embedding_size)

    a_hat = dense_norm_adj(edge_index, num_nodes, improved)         # (N, N)
    mask = (batch_index[None, :] == jnp.arange(num_graphs)[:, None]).astype(jnp.float32)

    out, hidden = gcn_forward(x, a_hat, mask, params, embedding_size)
    out = jax.block_until_ready(out)
    hidden = jax.block_until_ready(hidden)

    assert out.shape == (num_graphs, 1)
    assert hidden.shape == (num_graphs, 2 * embedding_size)

    # Tight check against a reference using the same bf16-matmul / f32-accumulate recipe.
    out_m, hidden_m = gcn_forward_ref_mixed(x, a_hat, mask, params)
    assert jnp.allclose(out, out_m, atol=2e-3, rtol=2e-3)
    assert jnp.allclose(hidden, hidden_m, atol=2e-3, rtol=2e-3)

    # Loose sanity check against the full-f32 semantics of the original module
    # (difference is only bf16 rounding on the matmul operands).
    out_f, hidden_f = gcn_forward_ref_f32(x, a_hat, mask, params)
    assert jnp.allclose(out, out_f, atol=2e-1, rtol=1e-1)
    assert jnp.allclose(hidden, hidden_f, atol=2e-1, rtol=1e-1)

    print("KERNEL_OK")
</pallas_src>

<mosaic_0001>
module attributes {stable_mosaic.version = 11 : i64} {
  func.func @_gcn_streamed_kernel(%arg0: i32, %arg1: i32, %arg2: memref<16x16xbf16, #tpu.memory_space<vmem>>, %arg3: memref<16x128xbf16, #tpu.memory_space<vmem>>, %arg4: memref<128x128xbf16, #tpu.memory_space<vmem>>, %arg5: memref<3x128x128xbf16, #tpu.memory_space<vmem>>, %arg6: memref<4x128xf32, #tpu.memory_space<vmem>>, %arg7: memref<8x16xf32, #tpu.memory_space<vmem>>, %arg8: memref<16x8xf32, #tpu.memory_space<vmem>>, %arg9: memref<2x128xf32, #tpu.memory_space<vmem>>, %arg10: memref<1xf32, #tpu.memory_space<smem>>, %arg11: memref<8x128xf32, #tpu.memory_space<vmem>>, %arg12: memref<8x256xf32, #tpu.memory_space<vmem>>, %arg13: memref<16x128xbf16, #tpu.memory_space<vmem>>, %arg14: memref<16x128xf32, #tpu.memory_space<vmem>>, %arg15: memref<1x128xf32, #tpu.memory_space<vmem>>) attributes {dimension_semantics = [#tpu.dimension_semantics<arbitrary>, #tpu.dimension_semantics<arbitrary>], iteration_bounds = array<i64: 4, 1>, scalar_prefetch = 0 : i64, scratch_operands = 3 : i64, tpu.core_type = #tpu.core_type<tc>, window_params = [{transform_indices = @transform_0, window_bounds = array<i64: 16, 16>}, {pipeline_mode = #tpu.pipeline_mode<synchronous>, transform_indices = @transform_1, window_bounds = array<i64: 16, 128>}, {pipeline_mode = #tpu.pipeline_mode<synchronous>, transform_indices = @transform_2, window_bounds = array<i64: 128, 128>}, {pipeline_mode = #tpu.pipeline_mode<synchronous>, transform_indices = @transform_3, window_bounds = array<i64: 3, 128, 128>}, {pipeline_mode = #tpu.pipeline_mode<synchronous>, transform_indices = @transform_4, window_bounds = array<i64: 4, 128>}, {pipeline_mode = #tpu.pipeline_mode<synchronous>, transform_indices = @transform_5, window_bounds = array<i64: 8, 16>}, {pipeline_mode = #tpu.pipeline_mode<synchronous>, transform_indices = @transform_6, window_bounds = array<i64: 16, 8>}, {pipeline_mode = #tpu.pipeline_mode<synchronous>, transform_indices = @transform_7, window_bounds = array<i64: 2, 128>}, {transform_indices = @transform_8, window_bounds = array<i64: 1>}, {pipeline_mode = #tpu.pipeline_mode<synchronous>, transform_indices = @transform_9, window_bounds = array<i64: 8, 128>}, {pipeline_mode = #tpu.pipeline_mode<synchronous>, transform_indices = @transform_10, window_bounds = array<i64: 8, 256>}]} {
    %c0_i32 = arith.constant 0 : i32
    %0 = arith.cmpi eq, %arg1, %c0_i32 : i32
    %1 = arith.extui %0 : i1 to i32
    %c0_i32_0 = arith.constant 0 : i32
    %2 = arith.cmpi ne, %1, %c0_i32_0 : i32
    scf.if %2 {
      %c0_i32_9 = arith.constant 0 : i32
      %19 = arith.cmpi eq, %arg0, %c0_i32_9 : i32
      %20 = arith.extui %19 : i1 to i32
      %c0_i32_10 = arith.constant 0 : i32
      %21 = arith.cmpi ne, %20, %c0_i32_10 : i32
      scf.if %21 {
        %c0_15 = arith.constant 0 : index
        %c0_16 = arith.constant 0 : index
        %31 = vector.load %arg3[%c0_15, %c0_16] : memref<16x128xbf16, #tpu.memory_space<vmem>>, vector<16x128xbf16>
        %c0_17 = arith.constant 0 : index
        %c0_18 = arith.constant 0 : index
        %32 = vector.load %arg4[%c0_17, %c0_18] : memref<128x128xbf16, #tpu.memory_space<vmem>>, vector<128x128xbf16>
        %cst_19 = arith.constant dense<0.000000e+00> : vector<16x128xf32>
        %33 = tpu.matmul %31, %32, %cst_19 {dimension_numbers = #tpu.dot_dimension_numbers<[1], [0], [0], [1], [0, 0, 1, 1], [], []>} : vector<16x128xbf16>, vector<128x128xbf16>, vector<16x128xf32> -> vector<16x128xf32>
        %34 = arith.truncf %33 : vector<16x128xf32> to vector<16x128xbf16>
        %c0_20 = arith.constant 0 : index
        %c0_21 = arith.constant 0 : index
        %35 = vector.load %arg13[%c0_20, %c0_21] : memref<16x128xbf16, #tpu.memory_space<vmem>>, vector<16x128xbf16>
        tpu.vector_store %arg13[%c0_20, %c0_21], %34 {strides = array<i32>} : memref<16x128xbf16, #tpu.memory_space<vmem>>, vector<16x128xbf16>,
        %c0_22 = arith.constant 0 : index
        %c0_23 = arith.constant 0 : index
        %36 = vector.load %arg6[%c0_22, %c0_23] : memref<4x128xf32, #tpu.memory_space<vmem>>, vector<1x128xf32>
        %c0_24 = arith.constant 0 : index
        %c0_25 = arith.constant 0 : index
        %37 = vector.load %arg15[%c0_24, %c0_25] : memref<1x128xf32, #tpu.memory_space<vmem>>, vector<1x128xf32>
        tpu.vector_store %arg15[%c0_24, %c0_25], %36 {strides = array<i32>} : memref<1x128xf32, #tpu.memory_space<vmem>>, vector<1x128xf32>,
      } else {
      }
      %c1_i32 = arith.constant 1 : i32
      %22 = arith.cmpi eq, %arg0, %c1_i32 : i32
      %23 = arith.extui %22 : i1 to i32
      %c0_i32_11 = arith.constant 0 : i32
      %24 = arith.cmpi ne, %23, %c0_i32_11 : i32
      scf.if %24 {
        %c0_15 = arith.constant 0 : index
        %c0_16 = arith.constant 0 : index
        %31 = vector.load %arg14[%c0_15, %c0_16] : memref<16x128xf32, #tpu.memory_space<vmem>>, vector<16x128xf32>
        %32 = arith.truncf %31 : vector<16x128xf32> to vector<16x128xbf16>
        %c0_17 = arith.constant 0 : index
        %c0_18 = arith.constant 0 : index
        %c0_19 = arith.constant 0 : index
        %33 = vector.load %arg5[%c0_17, %c0_18, %c0_19] : memref<3x128x128xbf16, #tpu.memory_space<vmem>>, vector<1x128x128xbf16>
        %34 = vector.shape_cast %33 : vector<1x128x128xbf16> to vector<128x128xbf16>
        %cst_20 = arith.constant dense<0.000000e+00> : vector<16x128xf32>
        %35 = tpu.matmul %32, %34, %cst_20 {dimension_numbers = #tpu.dot_dimension_numbers<[1], [0], [0], [1], [0, 0, 1, 1], [], []>} : vector<16x128xbf16>, vector<128x128xbf16>, vector<16x128xf32> -> vector<16x128xf32>
        %36 = arith.truncf %35 : vector<16x128xf32> to vector<16x128xbf16>
        %c0_21 = arith.constant 0 : index
        %c0_22 = arith.constant 0 : index
        %37 = vector.load %arg13[%c0_21, %c0_22] : memref<16x128xbf16, #tpu.memory_space<vmem>>, vector<16x128xbf16>
        tpu.vector_store %arg13[%c0_21, %c0_22], %36 {strides = array<i32>} : memref<16x128xbf16, #tpu.memory_space<vmem>>, vector<16x128xbf16>,
        %c1 = arith.constant 1 : index
        %c0_23 = arith.constant 0 : index
        %38 = vector.load %arg6[%c1, %c0_23] : memref<4x128xf32, #tpu.memory_space<vmem>>, vector<1x128xf32>
        %c0_24 = arith.constant 0 : index
        %c0_25 = arith.constant 0 : index
        %39 = vector.load %arg15[%c0_24, %c0_25] : memref<1x128xf32, #tpu.memory_space<vmem>>, vector<1x128xf32>
        tpu.vector_store %arg15[%c0_24, %c0_25], %38 {strides = array<i32>} : memref<1x128xf32, #tpu.memory_space<vmem>>, vector<1x128xf32>,
      } else {
      }
      %c2_i32 = arith.constant 2 : i32
      %25 = arith.cmpi eq, %arg0, %c2_i32 : i32
      %26 = arith.extui %25 : i1 to i32
      %c0_i32_12 = arith.constant 0 : i32
      %27 = arith.cmpi ne, %26, %c0_i32_12 : i32
      scf.if %27 {
        %c0_15 = arith.constant 0 : index
        %c0_16 = arith.constant 0 : index
        %31 = vector.load %arg14[%c0_15, %c0_16] : memref<16x128xf32, #tpu.memory_space<vmem>>, vector<16x128xf32>
        %32 = arith.truncf %31 : vector<16x128xf32> to vector<16x128xbf16>
        %c1 = arith.constant 1 : index
        %c0_17 = arith.constant 0 : index
        %c0_18 = arith.constant 0 : index
        %33 = vector.load %arg5[%c1, %c0_17, %c0_18] : memref<3x128x128xbf16, #tpu.memory_space<vmem>>, vector<1x128x128xbf16>
        %34 = vector.shape_cast %33 : vector<1x128x128xbf16> to vector<128x128xbf16>
        %cst_19 = arith.constant dense<0.000000e+00> : vector<16x128xf32>
        %35 = tpu.matmul %32, %34, %cst_19 {dimension_numbers = #tpu.dot_dimension_numbers<[1], [0], [0], [1], [0, 0, 1, 1], [], []>} : vector<16x128xbf16>, vector<128x128xbf16>, vector<16x128xf32> -> vector<16x128xf32>
        %36 = arith.truncf %35 : vector<16x128xf32> to vector<16x128xbf16>
        %c0_20 = arith.constant 0 : index
        %c0_21 = arith.constant 0 : index
        %37 = vector.load %arg13[%c0_20, %c0_21] : memref<16x128xbf16, #tpu.memory_space<vmem>>, vector<16x128xbf16>
        tpu.vector_store %arg13[%c0_20, %c0_21], %36 {strides = array<i32>} : memref<16x128xbf16, #tpu.memory_space<vmem>>, vector<16x128xbf16>,
        %c2 = arith.constant 2 : index
        %c0_22 = arith.constant 0 : index
        %38 = vector.load %arg6[%c2, %c0_22] : memref<4x128xf32, #tpu.memory_space<vmem>>, vector<1x128xf32>
        %c0_23 = arith.constant 0 : index
        %c0_24 = arith.constant 0 : index
        %39 = vector.load %arg15[%c0_23, %c0_24] : memref<1x128xf32, #tpu.memory_space<vmem>>, vector<1x128xf32>
        tpu.vector_store %arg15[%c0_23, %c0_24], %38 {strides = array<i32>} : memref<1x128xf32, #tpu.memory_space<vmem>>, vector<1x128xf32>,
      } else {
      }
      %c3_i32_13 = arith.constant 3 : i32
      %28 = arith.cmpi eq, %arg0, %c3_i32_13 : i32
      %29 = arith.extui %28 : i1 to i32
      %c0_i32_14 = arith.constant 0 : i32
      %30 = arith.cmpi ne, %29, %c0_i32_14 : i32
      scf.if %30 {
        %c0_15 = arith.constant 0 : index
        %c0_16 = arith.constant 0 : index
        %31 = vector.load %arg14[%c0_15, %c0_16] : memref<16x128xf32, #tpu.memory_space<vmem>>, vector<16x128xf32>
        %32 = arith.truncf %31 : vector<16x128xf32> to vector<16x128xbf16>
        %c2 = arith.constant 2 : index
        %c0_17 = arith.constant 0 : index
        %c0_18 = arith.constant 0 : index
        %33 = vector.load %arg5[%c2, %c0_17, %c0_18] : memref<3x128x128xbf16, #tpu.memory_space<vmem>>, vector<1x128x128xbf16>
        %34 = vector.shape_cast %33 : vector<1x128x128xbf16> to vector<128x128xbf16>
        %cst_19 = arith.constant dense<0.000000e+00> : vector<16x128xf32>
        %35 = tpu.matmul %32, %34, %cst_19 {dimension_numbers = #tpu.dot_dimension_numbers<[1], [0], [0], [1], [0, 0, 1, 1], [], []>} : vector<16x128xbf16>, vector<128x128xbf16>, vector<16x128xf32> -> vector<16x128xf32>
        %36 = arith.truncf %35 : vector<16x128xf32> to vector<16x128xbf16>
        %c0_20 = arith.constant 0 : index
        %c0_21 = arith.constant 0 : index
        %37 = vector.load %arg13[%c0_20, %c0_21] : memref<16x128xbf16, #tpu.memory_space<vmem>>, vector<16x128xbf16>
        tpu.vector_store %arg13[%c0_20, %c0_21], %36 {strides = array<i32>} : memref<16x128xbf16, #tpu.memory_space<vmem>>, vector<16x128xbf16>,
        %c3 = arith.constant 3 : index
        %c0_22 = arith.constant 0 : index
        %38 = vector.load %arg6[%c3, %c0_22] : memref<4x128xf32, #tpu.memory_space<vmem>>, vector<1x128xf32>
        %c0_23 = arith.constant 0 : index
        %c0_24 = arith.constant 0 : index
        %39 = vector.load %arg15[%c0_23, %c0_24] : memref<1x128xf32, #tpu.memory_space<vmem>>, vector<1x128xf32>
        tpu.vector_store %arg15[%c0_23, %c0_24], %38 {strides = array<i32>} : memref<1x128xf32, #tpu.memory_space<vmem>>, vector<1x128xf32>,
      } else {
      }
    } else {
    }
    %c0 = arith.constant 0 : index
    %c0_1 = arith.constant 0 : index
    %3 = vector.load %arg2[%c0, %c0_1] : memref<16x16xbf16, #tpu.memory_space<vmem>>, vector<16x16xbf16>
    %c0_2 = arith.constant 0 : index
    %c0_3 = arith.constant 0 : index
    %4 = vector.load %arg13[%c0_2, %c0_3] : memref<16x128xbf16, #tpu.memory_space<vmem>>, vector<16x128xbf16>
    %cst = arith.constant dense<0.000000e+00> : vector<16x128xf32>
    %5 = tpu.matmul %3, %4, %cst {dimension_numbers = #tpu.dot_dimension_numbers<[1], [0], [0], [1], [0, 0, 1, 1], [], []>} : vector<16x16xbf16>, vector<16x128xbf16>, vector<16x128xf32> -> vector<16x128xf32>
    %c16_i32 = arith.constant 16 : i32
    %6 = arith.muli %arg1, %c16_i32 : i32
    %7 = tpu.assume_multiple %6, 16 : i32
    %c0_4 = arith.constant 0 : index
    %c0_5 = arith.constant 0 : index
    %8 = vector.load %arg15[%c0_4, %c0_5] : memref<1x128xf32, #tpu.memory_space<vmem>>, vector<1x128xf32>
    %9 = vector.broadcast %8 : vector<1x128xf32> to vector<16x128xf32>
    %10 = arith.addf %5, %9 : vector<16x128xf32>
    %11 = math.tanh %10 : vector<16x128xf32>
    %12 = arith.index_cast %7 : i32 to index
    %c0_6 = arith.constant 0 : index
    %13 = vector.load %arg14[%12, %c0_6] : memref<16x128xf32, #tpu.memory_space<vmem>>, vector<16x128xf32>
    tpu.vector_store %arg14[%12, %c0_6], %11 {strides = array<i32>} : memref<16x128xf32, #tpu.memory_space<vmem>>, vector<16x128xf32>,
    %c3_i32 = arith.constant 3 : i32
    %14 = arith.cmpi eq, %arg0, %c3_i32 : i32
    %c0_i32_7 = arith.constant 0 : i32
    %15 = arith.cmpi eq, %arg1, %c0_i32_7 : i32
    %16 = arith.andi %14, %15 : i1
    %17 = arith.extui %16 : i1 to i32
    %c0_i32_8 = arith.constant 0 : i32
    %18 = arith.cmpi ne, %17, %c0_i32_8 : i32
    scf.if %18 {
      %c0_9 = arith.constant 0 : index
      %c0_10 = arith.constant 0 : index
      %19 = vector.load %arg14[%c0_9, %c0_10] : memref<16x128xf32, #tpu.memory_space<vmem>>, vector<16x128xf32>
      %c0_11 = arith.constant 0 : index
      %c0_12 = arith.constant 0 : index
      %20 = vector.load %arg7[%c0_11, %c0_12] : memref<8x16xf32, #tpu.memory_space<vmem>>, vector<8x16xf32>
      %cst_13 = arith.constant dense<0.000000e+00> : vector<8x128xf32>
      %21 = tpu.matmul %20, %19, %cst_13 {dimension_numbers = #tpu.dot_dimension_numbers<[1], [0], [0], [1], [0, 0, 1, 1], [], []>} : vector<8x16xf32>, vector<16x128xf32>, vector<8x128xf32> -> vector<8x128xf32>
      %c0_14 = arith.constant 0 : index
      %c0_15 = arith.constant 0 : index
      %22 = vector.load %arg8[%c0_14, %c0_15] : memref<16x8xf32, #tpu.memory_space<vmem>>, vector<16x8xf32>
      %23 = vector.extract_strided_slice %22 {offsets = [0, 0], sizes = [16, 1], strides = [1, 1]} : vector<16x8xf32> to vector<16x1xf32>
      %24 = vector.broadcast %23 : vector<16x1xf32> to vector<16x128xf32>
      %25 = arith.addf %19, %24 : vector<16x128xf32>
      %cst_16 = arith.constant dense<0xFF800000> : vector<128xf32>
      %26 = vector.multi_reduction <maximumf>, %25, %cst_16 [0] : vector<16x128xf32> to vector<128xf32>
      %27 = vector.shape_cast %26 : vector<128xf32> to vector<1x128xf32>
      %28 = vector.extract_strided_slice %22 {offsets = [0, 1], sizes = [16, 1], strides = [1, 1]} : vector<16x8xf32> to vector<16x1xf32>
      %29 = vector.broadcast %28 : vector<16x1xf32> to vector<16x128xf32>
      %30 = arith.addf %19, %29 : vector<16x128xf32>
      %cst_17 = arith.constant dense<0xFF800000> : vector<128xf32>
      %31 = vector.multi_reduction <maximumf>, %30, %cst_17 [0] : vector<16x128xf32> to vector<128xf32>
      %32 = vector.shape_cast %31 : vector<128xf32> to vector<1x128xf32>
      %33 = vector.extract_strided_slice %22 {offsets = [0, 2], sizes = [16, 1], strides = [1, 1]} : vector<16x8xf32> to vector<16x1xf32>
      %34 = vector.broadcast %33 : vector<16x1xf32> to vector<16x128xf32>
      %35 = arith.addf %19, %34 : vector<16x128xf32>
      %cst_18 = arith.constant dense<0xFF800000> : vector<128xf32>
      %36 = vector.multi_reduction <maximumf>, %35, %cst_18 [0] : vector<16x128xf32> to vector<128xf32>
      %37 = vector.shape_cast %36 : vector<128xf32> to vector<1x128xf32>
      %38 = vector.extract_strided_slice %22 {offsets = [0, 3], sizes = [16, 1], strides = [1, 1]} : vector<16x8xf32> to vector<16x1xf32>
      %39 = vector.broadcast %38 : vector<16x1xf32> to vector<16x128xf32>
      %40 = arith.addf %19, %39 : vector<16x128xf32>
      %cst_19 = arith.constant dense<0xFF800000> : vector<128xf32>
      %41 = vector.multi_reduction <maximumf>, %40, %cst_19 [0] : vector<16x128xf32> to vector<128xf32>
      %42 = vector.shape_cast %41 : vector<128xf32> to vector<1x128xf32>
      %43 = vector.extract_strided_slice %22 {offsets = [0, 4], sizes = [16, 1], strides = [1, 1]} : vector<16x8xf32> to vector<16x1xf32>
      %44 = vector.broadcast %43 : vector<16x1xf32> to vector<16x128xf32>
      %45 = arith.addf %19, %44 : vector<16x128xf32>
      %cst_20 = arith.constant dense<0xFF800000> : vector<128xf32>
      %46 = vector.multi_reduction <maximumf>, %45, %cst_20 [0] : vector<16x128xf32> to vector<128xf32>
      %47 = vector.shape_cast %46 : vector<128xf32> to vector<1x128xf32>
      %48 = vector.extract_strided_slice %22 {offsets = [0, 5], sizes = [16, 1], strides = [1, 1]} : vector<16x8xf32> to vector<16x1xf32>
      %49 = vector.broadcast %48 : vector<16x1xf32> to vector<16x128xf32>
      %50 = arith.addf %19, %49 : vector<16x128xf32>
      %cst_21 = arith.constant dense<0xFF800000> : vector<128xf32>
      %51 = vector.multi_reduction <maximumf>, %50, %cst_21 [0] : vector<16x128xf32> to vector<128xf32>
      %52 = vector.shape_cast %51 : vector<128xf32> to vector<1x128xf32>
      %53 = vector.extract_strided_slice %22 {offsets = [0, 6], sizes = [16, 1], strides = [1, 1]} : vector<16x8xf32> to vector<16x1xf32>
      %54 = vector.broadcast %53 : vector<16x1xf32> to vector<16x128xf32>
      %55 = arith.addf %19, %54 : vector<16x128xf32>
      %cst_22 = arith.constant dense<0xFF800000> : vector<128xf32>
      %56 = vector.multi_reduction <maximumf>, %55, %cst_22 [0] : vector<16x128xf32> to vector<128xf32>
      %57 = vector.shape_cast %56 : vector<128xf32> to vector<1x128xf32>
      %58 = vector.extract_strided_slice %22 {offsets = [0, 7], sizes = [16, 1], strides = [1, 1]} : vector<16x8xf32> to vector<16x1xf32>
      %59 = vector.broadcast %58 : vector<16x1xf32> to vector<16x128xf32>
      %60 = arith.addf %19, %59 : vector<16x128xf32>
      %cst_23 = arith.constant dense<0xFF800000> : vector<128xf32>
      %61 = vector.multi_reduction <maximumf>, %60, %cst_23 [0] : vector<16x128xf32> to vector<128xf32>
      %62 = vector.shape_cast %61 : vector<128xf32> to vector<1x128xf32>
      %63 = tpu.concatenate %27, %32, %37, %42, %47, %52, %57, %62 in 0 : vector<1x128xf32>, vector<1x128xf32>, vector<1x128xf32>, vector<1x128xf32>, vector<1x128xf32>, vector<1x128xf32>, vector<1x128xf32>, vector<1x128xf32> -> vector<8x128xf32>
      %c0_24 = arith.constant 0 : index
      %c0_25 = arith.constant 0 : index
      %64 = vector.load %arg12[%c0_24, %c0_25] : memref<8x256xf32, #tpu.memory_space<vmem>>, vector<8x128xf32>
      tpu.vector_store %arg12[%c0_24, %c0_25], %63 {strides = array<i32>} : memref<8x256xf32, #tpu.memory_space<vmem>>, vector<8x128xf32>,
      %c0_26 = arith.constant 0 : index
      %c128 = arith.constant 128 : index
      %65 = vector.load %arg12[%c0_26, %c128] : memref<8x256xf32, #tpu.memory_space<vmem>>, vector<8x128xf32>
      tpu.vector_store %arg12[%c0_26, %c128], %21 {strides = array<i32>} : memref<8x256xf32, #tpu.memory_space<vmem>>, vector<8x128xf32>,
      %c0_27 = arith.constant 0 : index
      %c0_28 = arith.constant 0 : index
      %66 = vector.load %arg9[%c0_27, %c0_28] : memref<2x128xf32, #tpu.memory_space<vmem>>, vector<1x128xf32>
      %67 = vector.broadcast %66 : vector<1x128xf32> to vector<8x128xf32>
      %68 = arith.mulf %63, %67 : vector<8x128xf32>
      %c1 = arith.constant 1 : index
      %c0_29 = arith.constant 0 : index
      %69 = vector.load %arg9[%c1, %c0_29] : memref<2x128xf32, #tpu.memory_space<vmem>>, vector<1x128xf32>
      %70 = vector.broadcast %69 : vector<1x128xf32> to vector<8x128xf32>
      %71 = arith.mulf %21, %70 : vector<8x128xf32>
      %72 = arith.addf %68, %71 : vector<8x128xf32>
      %cst_30 = arith.constant dense<0.000000e+00> : vector<8xf32>
      %73 = vector.multi_reduction <add>, %72, %cst_30 [1] : vector<8x128xf32> to vector<8xf32>
      %74 = vector.shape_cast %73 : vector<8xf32> to vector<8x1xf32>
      %c0_31 = arith.constant 0 : index
      %75 = memref.load %arg10[%c0_31] : memref<1xf32, #tpu.memory_space<smem>>
      %76 = vector.broadcast %75 : f32 to vector<8x1xf32>
      %77 = arith.addf %74, %76 : vector<8x1xf32>
      %78 = vector.shape_cast %77 : vector<8x1xf32> to vector<8x1xf32>
      %79 = vector.broadcast %78 : vector<8x1xf32> to vector<8x128xf32>
      %c0_32 = arith.constant 0 : index
      %c0_33 = arith.constant 0 : index
      %80 = vector.load %arg11[%c0_32, %c0_33] : memref<8x128xf32, #tpu.memory_space<vmem>>, vector<8x128xf32>
      tpu.vector_store %arg11[%c0_32, %c0_33], %79 {strides = array<i32>} : memref<8x128xf32, #tpu.memory_space<vmem>>, vector<8x128xf32>,
    } else {
    }
    return
  }
  func.func @transform_0(%arg0: i32, %arg1: i32) -> (i32, i32) {
    %c0_i32 = arith.constant 0 : i32
    %c0_i32_0 = arith.constant 0 : i32
    return %arg1, %c0_i32 : i32, i32
  }
  func.func @transform_1(%arg0: i32, %arg1: i32) -> (i32, i32) {
    %c0_i32 = arith.constant 0 : i32
    %c0_i32_0 = arith.constant 0 : i32
    %c0_i32_1 = arith.constant 0 : i32
    return %c0_i32, %c0_i32_0 : i32, i32
  }
  func.func @transform_2(%arg0: i32, %arg1: i32) -> (i32, i32) {
    %c0_i32 = arith.constant 0 : i32
    %c0_i32_0 = arith.constant 0 : i32
    %c0_i32_1 = arith.constant 0 : i32
    return %c0_i32, %c0_i32_0 : i32, i32
  }
  func.func @transform_3(%arg0: i32, %arg1: i32) -> (i32, i32, i32) {
    %c0_i32 = arith.constant 0 : i32
    %c0_i32_0 = arith.constant 0 : i32
    %c0_i32_1 = arith.constant 0 : i32
    %c0_i32_2 = arith.constant 0 : i32
    return %c0_i32, %c0_i32_0, %c0_i32_1 : i32, i32, i32
  }
  func.func @transform_4(%arg0: i32, %arg1: i32) -> (i32, i32) {
    %c0_i32 = arith.constant 0 : i32
    %c0_i32_0 = arith.constant 0 : i32
    %c0_i32_1 = arith.constant 0 : i32
    return %c0_i32, %c0_i32_0 : i32, i32
  }
  func.func @transform_5(%arg0: i32, %arg1: i32) -> (i32, i32) {
    %c0_i32 = arith.constant 0 : i32
    %c0_i32_0 = arith.constant 0 : i32
    %c0_i32_1 = arith.constant 0 : i32
    return %c0_i32, %c0_i32_0 : i32, i32
  }
  func.func @transform_6(%arg0: i32, %arg1: i32) -> (i32, i32) {
    %c0_i32 = arith.constant 0 : i32
    %c0_i32_0 = arith.constant 0 : i32
    %c0_i32_1 = arith.constant 0 : i32
    return %c0_i32, %c0_i32_0 : i32, i32
  }
  func.func @transform_7(%arg0: i32, %arg1: i32) -> (i32, i32) {
    %c0_i32 = arith.constant 0 : i32
    %c0_i32_0 = arith.constant 0 : i32
    %c0_i32_1 = arith.constant 0 : i32
    return %c0_i32, %c0_i32_0 : i32, i32
  }
  func.func @transform_8(%arg0: i32, %arg1: i32) -> i32 {
    %c0_i32 = arith.constant 0 : i32
    %c0_i32_0 = arith.constant 0 : i32
    return %c0_i32 : i32
  }
  func.func @transform_9(%arg0: i32, %arg1: i32) -> (i32, i32) {
    %c0_i32 = arith.constant 0 : i32
    %c0_i32_0 = arith.constant 0 : i32
    %c0_i32_1 = arith.constant 0 : i32
    return %c0_i32, %c0_i32_0 : i32, i32
  }
  func.func @transform_10(%arg0: i32, %arg1: i32) -> (i32, i32) {
    %c0_i32 = arith.constant 0 : i32
    %c0_i32_0 = arith.constant 0 : i32
    %c0_i32_1 = arith.constant 0 : i32
    return %c0_i32, %c0_i32_0 : i32, i32
  }
}

</mosaic_0001>

<bundles_post_ra>
// kernel: gcn_forward.1
= control target key start
LH: loop header
LB: loop body
LE: loop exit
PB: predicated region body
PF: predicated region fallthrough
CT: control target
= control target key end

     0   :  { %s1409_s15 = smov 0   ;;  %s1411_s16 = smov 0   ;;  %s1609_s0 = inlined_call_operand.vmem [shape: bf16[16,16], index: 0, kind: input, shape index: {}]   ;;  %s1610_s1 = inlined_call_operand.vmem [shape: bf16[16,128], index: 1, kind: input, shape index: {}]   ;;  %s1611_s2 = inlined_call_operand.vmem [shape: bf16[128,128], index: 2, kind: input, shape index: {}]   ;;  %s1612_s3 = inlined_call_operand.vmem [shape: bf16[3,128,128], index: 3, kind: input, shape index: {}]   ;;  %s1613_s4 = inlined_call_operand.vmem [shape: f32[4,128], index: 4, kind: input, shape index: {}]   ;;  %s1614_s5 = inlined_call_operand.vmem [shape: f32[8,16], index: 5, kind: input, shape index: {}]   ;;  %s1615_s6 = inlined_call_operand.vmem [shape: f32[16,8], index: 6, kind: input, shape index: {}]   ;;  %s1616_s7 = inlined_call_operand.vmem [shape: f32[2,128], index: 7, kind: input, shape index: {}]   ;;  %s1617_s8 = inlined_call_operand.<no memory space> [shape: f32[1], index: 8, kind: input, shape index: {}]   ;;  %s1618_s9 = inlined_call_operand.vmem [shape: f32[8,128], index: 9, kind: output, shape index: {0}]   ;;  %s1619_s10 = inlined_call_operand.vmem [shape: f32[8,256], index: 10, kind: output, shape index: {1}]  }
   0x1   :  { %16 = sst [smem:[#allocation5]] %s1617_s8  ;;  %s1413_s17 = smov 0  }
   0x2 LB: > { %s34_s8 = sadd.s32 1, %s1337_s16  ;;  %p1028_p0 = scmp.ge.s32.totalorder %s1341_s17, 1  ;;  %s1341_s17 = sphi %s1413_s17, %s22_s17   ;;  %s1337_s16 = sphi %s1411_s16, %s1621_s16   ;;  %s1333_s15 = sphi %s1409_s15, %s1620_s15  }
   0x3   : > { %p36_p1 = scmp.ge.s32.totalorder %s34_s8, 4  ;;  %p319_p2 = scmp.lt.s32.totalorder %s1341_s17, 5 }
   0x5   : > { %s1623_s8 = smov (%p36_p1, %s34_s8), 0  ;;  %p320_p3 = pnand %p1028_p0, %p319_p2 }
   0x6   : > { %p1029_p4 = scmp.ne.s32.totalorder (!%p320_p3), %s1333_s15, 0 }
   0x7   : > { %323 = sbr.rel (%p320_p3) target bundleno = 1127 (0x467), region = 56 }
   0xc   : > { %366 = sbr.rel (%p1029_p4) target bundleno = 186 (0xba), region = 64 }
  0x11   : > { %v1218_v0 = vld [vmem:[%s1611_s2 + $0x38] sm:$0xff]  ;;  %v1217_v1 = vld [vmem:[%s1611_s2 + $0x30] sm:$0xff]  ;;  %v1216_v2 = vld [vmem:[%s1611_s2 + $0x28] sm:$0xff] }
  0x12   : > { %439 = vmatpush.bf16.msra.mxu0 %v1218_v0  ;;  %v1215_v3 = vld [vmem:[%s1611_s2 + $0x20] sm:$0xff]  ;;  %v1214_v4 = vld [vmem:[%s1611_s2 + $0x18] sm:$0xff]  ;;  %v1213_v5 = vld [vmem:[%s1611_s2 + $0x10] sm:$0xff] }
  0x13   : > { %v1212_v6 = vld [vmem:[%s1611_s2 + $0x8] sm:$0xff]  ;;  %v1211_v7 = vld [vmem:[%s1611_s2] sm:$0xff] }
  0x14   : > { %v1210_v8 = vld [vmem:[%s1610_s1] sm:$0xff] }
  0x15   : > { %v457_v9 = vld [vmem:[%s1613_s4] sm:$0x1] }
  0x16   : > { %440 = vmatpush.bf16.msra.mxu0 %v1217_v1  ;;  %458 = vst [vmem:[#allocation4] sm:$0x1] %v457_v9 }
  0x1a   : > { %441 = vmatpush.bf16.msra.mxu0 %v1216_v2 }
  0x1e   : > { %442 = vmatpush.bf16.msra.mxu0 %v1215_v3 }
  0x22   : > { %443 = vmatpush.bf16.msra.mxu0 %v1214_v4 }
  0x26   : > { %444 = vmatpush.bf16.msra.mxu0 %v1213_v5 }
  0x2a   : > { %445 = vmatpush.bf16.msra.mxu0 %v1212_v6 }
  0x2e   : > { %446 = vmatpush.bf16.msra.mxu0 %v1211_v7 }
  0x31   : > { %447 = vmatmul.bf16.vlgmr.msra.gmra.mxu0 %v1210_v8 }
  0xae   : > { %v448_v10 = vpop.f32.mrf.mxu0 }
  0xb6   : > { %v450_v11 = vpop.f32.mrf.mxu0 }
  0xb7   : > { %v1249_v12 = vpack.c.bf16 %v450_v11, %v448_v10 }
  0xb9   : > { %1250 = vst [vmem:[#allocation2] sm:$0xff] %v1249_v12  }
  0xba PF: > { %p1066_p5 = scmp.ne.s32.totalorder %s1333_s15, 1 }
  0xbc   : > { %462 = sbr.rel (%p1066_p5) target bundleno = 362 (0x16a), region = 68 }
  0xc1   : > { %v1226_v13 = vld [vmem:[%s1612_s3 + $0x38] sm:$0xff]  ;;  %v1225_v14 = vld [vmem:[%s1612_s3 + $0x30] sm:$0xff]  ;;  %v1224_v15 = vld [vmem:[%s1612_s3 + $0x28] sm:$0xff] }
  0xc2   : > { %530 = vmatpush.bf16.msra.mxu0 %v1226_v13  ;;  %v1223_v16 = vld [vmem:[%s1612_s3 + $0x20] sm:$0xff]  ;;  %v1222_v17 = vld [vmem:[%s1612_s3 + $0x18] sm:$0xff]  ;;  %v1221_v18 = vld [vmem:[%s1612_s3 + $0x10] sm:$0xff] }
  0xc3   : > { %v1220_v19 = vld [vmem:[%s1612_s3 + $0x8] sm:$0xff]  ;;  %v1219_v20 = vld [vmem:[%s1612_s3] sm:$0xff]  ;;  %v464_v22 = vld [vmem:[#allocation3 + $0x8] sm:$0xff] }
  0xc4   : > { %v463_v21 = vld [vmem:[#allocation3] sm:$0xff]  ;;  %v548_v24 = vld [vmem:[%s1613_s4 + $0x1] sm:$0x1] }
  0xc5   : > { %v465_v23 = vpack.c.bf16 %v464_v22, %v463_v21  ;;  %549 = vst [vmem:[#allocation4] sm:$0x1] %v548_v24 }
  0xc6   : > { %531 = vmatpush.bf16.msra.mxu0 %v1225_v14 }
  0xca   : > { %532 = vmatpush.bf16.msra.mxu0 %v1224_v15 }
  0xce   : > { %533 = vmatpush.bf16.msra.mxu0 %v1223_v16 }
  0xd2   : > { %534 = vmatpush.bf16.msra.mxu0 %v1222_v17 }
  0xd6   : > { %535 = vmatpush.bf16.msra.mxu0 %v1221_v18 }
  0xda   : > { %536 = vmatpush.bf16.msra.mxu0 %v1220_v19 }
  0xde   : > { %537 = vmatpush.bf16.msra.mxu0 %v1219_v20 }
  0xe1   : > { %538 = vmatmul.bf16.vlgmr.msra.gmra.mxu0 %v465_v23 }
 0x15e   : > { %v539_v25 = vpop.f32.mrf.mxu0 }
 0x166   : > { %v541_v26 = vpop.f32.mrf.mxu0 }
 0x167   : > { %v1254_v27 = vpack.c.bf16 %v541_v26, %v539_v25 }
 0x169   : > { %1255 = vst [vmem:[#allocation2] sm:$0xff] %v1254_v27  }
 0x16a PF: > { %p1099_p6 = scmp.ne.s32.totalorder %s1333_s15, 2 }
 0x16c   : > { %553 = sbr.rel (%p1099_p6) target bundleno = 538 (0x21a), region = 72 }
 0x171   : > { %v1234_v28 = vld [vmem:[%s1612_s3 + $0x78] sm:$0xff]  ;;  %v1233_v29 = vld [vmem:[%s1612_s3 + $0x70] sm:$0xff]  ;;  %v1232_v30 = vld [vmem:[%s1612_s3 + $0x68] sm:$0xff] }
 0x172   : > { %622 = vmatpush.bf16.msra.mxu0 %v1234_v28  ;;  %v1231_v31 = vld [vmem:[%s1612_s3 + $0x60] sm:$0xff]  ;;  %v1230_v32 = vld [vmem:[%s1612_s3 + $0x58] sm:$0xff]  ;;  %v1229_v33 = vld [vmem:[%s1612_s3 + $0x50] sm:$0xff] }
 0x173   : > { %v1228_v34 = vld [vmem:[%s1612_s3 + $0x48] sm:$0xff]  ;;  %v1227_v35 = vld [vmem:[%s1612_s3 + $0x40] sm:$0xff]  ;;  %v555_v37 = vld [vmem:[#allocation3 + $0x8] sm:$0xff] }
 0x174   : > { %v554_v36 = vld [vmem:[#allocation3] sm:$0xff]  ;;  %v640_v39 = vld [vmem:[%s1613_s4 + $0x2] sm:$0x1] }
 0x175   : > { %v556_v38 = vpack.c.bf16 %v555_v37, %v554_v36  ;;  %641 = vst [vmem:[#allocation4] sm:$0x1] %v640_v39 }
 0x176   : > { %623 = vmatpush.bf16.msra.mxu0 %v1233_v29 }
 0x17a   : > { %624 = vmatpush.bf16.msra.mxu0 %v1232_v30 }
 0x17e   : > { %625 = vmatpush.bf16.msra.mxu0 %v1231_v31 }
 0x182   : > { %626 = vmatpush.bf16.msra.mxu0 %v1230_v32 }
 0x186   : > { %627 = vmatpush.bf16.msra.mxu0 %v1229_v33 }
 0x18a   : > { %628 = vmatpush.bf16.msra.mxu0 %v1228_v34 }
 0x18e   : > { %629 = vmatpush.bf16.msra.mxu0 %v1227_v35 }
 0x191   : > { %630 = vmatmul.bf16.vlgmr.msra.gmra.mxu0 %v556_v38 }
 0x20e   : > { %v631_v40 = vpop.f32.mrf.mxu0 }
 0x216   : > { %v633_v41 = vpop.f32.mrf.mxu0 }
 0x217   : > { %v1259_v42 = vpack.c.bf16 %v633_v41, %v631_v40 }
 0x219   : > { %1260 = vst [vmem:[#allocation2] sm:$0xff] %v1259_v42  }
 0x21a PF: > { %p1148_p7 = scmp.ne.s32.totalorder %s1333_s15, 3 }
 0x21c   : > { %645 = sbr.rel (%p1148_p7) target bundleno = 714 (0x2ca), region = 76 }
 0x221   : > { %v1242_v43 = vld [vmem:[%s1612_s3 + $0xb8] sm:$0xff]  ;;  %v1241_v44 = vld [vmem:[%s1612_s3 + $0xb0] sm:$0xff]  ;;  %v1240_v45 = vld [vmem:[%s1612_s3 + $0xa8] sm:$0xff] }
 0x222   : > { %714 = vmatpush.bf16.msra.mxu0 %v1242_v43  ;;  %v1239_v46 = vld [vmem:[%s1612_s3 + $0xa0] sm:$0xff]  ;;  %v1238_v47 = vld [vmem:[%s1612_s3 + $0x98] sm:$0xff]  ;;  %v1237_v48 = vld [vmem:[%s1612_s3 + $0x90] sm:$0xff] }
 0x223   : > { %v1236_v49 = vld [vmem:[%s1612_s3 + $0x88] sm:$0xff]  ;;  %v1235_v50 = vld [vmem:[%s1612_s3 + $0x80] sm:$0xff]  ;;  %v647_v52 = vld [vmem:[#allocation3 + $0x8] sm:$0xff] }
 0x224   : > { %v646_v51 = vld [vmem:[#allocation3] sm:$0xff]  ;;  %v732_v54 = vld [vmem:[%s1613_s4 + $0x3] sm:$0x1] }
 0x225   : > { %v648_v53 = vpack.c.bf16 %v647_v52, %v646_v51  ;;  %733 = vst [vmem:[#allocation4] sm:$0x1] %v732_v54 }
 0x226   : > { %715 = vmatpush.bf16.msra.mxu0 %v1241_v44 }
 0x22a   : > { %716 = vmatpush.bf16.msra.mxu0 %v1240_v45 }
 0x22e   : > { %717 = vmatpush.bf16.msra.mxu0 %v1239_v46 }
 0x232   : > { %718 = vmatpush.bf16.msra.mxu0 %v1238_v47 }
 0x236   : > { %719 = vmatpush.bf16.msra.mxu0 %v1237_v48 }
 0x23a   : > { %720 = vmatpush.bf16.msra.mxu0 %v1236_v49 }
 0x23e   : > { %721 = vmatpush.bf16.msra.mxu0 %v1235_v50 }
 0x241   : > { %722 = vmatmul.bf16.vlgmr.msra.gmra.mxu0 %v648_v53 }
 0x2be   : > { %v723_v55 = vpop.f32.mrf.mxu0 }
 0x2c6   : > { %v725_v56 = vpop.f32.mrf.mxu0 }
 0x2c7   : > { %v1264_v57 = vpack.c.bf16 %v725_v56, %v723_v55 }
 0x2c9   : > { %1265 = vst [vmem:[#allocation2] sm:$0xff] %v1264_v57  }
 0x2ca PF: > { %v1243_v59 = vld [vmem:[%s1609_s0] sm:$0xff]  ;;  %vm754_vm0 = vcmask 130048   ;;  %p777_p8 = scmp.eq.s32.totalorder %s1333_s15, 3  ;;  %v1298_v60 = vld [vmem:[#allocation4] ss:$0 sm:$0xff] }
 0x2cb   : > { %v808_v3 = vld [vmem:[%s1615_s6] sm:$0xff] (%p777_p8)  ;;  %v1343_v4 = vmov (%p777_p8), 1   ;;  %v1344_v5 = vmov (%p777_p8), 0   ;;  %v1345_v6 = vmov (%p777_p8), 2   ;;  %v809_v7 = vld [vmem:[%s1615_s6 + $0x8] sm:$0xff] (%p777_p8)  ;;  %v1346_v11 = vmov (%p777_p8), 3  }
 0x2cc   : > { %1304 = vset.pattern.permute.xlu1 (%p777_p8), %v1343_v4  ;;  %1303 = vset.pattern.permute.xlu0 (%p777_p8), %v1344_v5  ;;  %v784_v10 = vld [vmem:[%s1614_s5] sm:$0xff] (%p777_p8)  ;;  %v1347_v12 = vmov (%p777_p8), 4   ;;  %v1348_v13 = vmov (%p777_p8), 5   ;;  %v1349_v14 = vmov (%p777_p8), 6   ;;  %v1350_v15 = vmov (%p777_p8), 7   ;;  %s973_s22 = sld [smem:[#allocation5]] (%p777_p8) }
 0x2cd   : > { %830 = vperm.xlu1 (%p777_p8), %1304, %v808_v3   ;;  %812 = vperm.xlu0 (%p777_p8), %1303, %v808_v3   ;;  %vm948_vm1 = vcmask (%p777_p8), 1040384   ;;  %vm950_vm2 = vcmask (%p777_p8), 1041408   ;;  %vm952_vm3 = vcmask (%p777_p8), 1042432   ;;  %vm954_vm4 = vcmask (%p777_p8), 1043456  }
 0x2ce   : > { %1305 = vset.pattern.permute.xlu2 (%p777_p8), %v1345_v6  ;;  %vm956_vm5 = vcmask (%p777_p8), 1044480   ;;  %vm958_vm6 = vcmask (%p777_p8), 1045504   ;;  %vm960_vm7 = vcmask (%p777_p8), 1046528  }
 0x2cf   : > { %847 = vperm.xlu2 (%p777_p8), %1305, %v808_v3  }
 0x2d0   : > { %v1244_v58 = vld [vmem:[#allocation2] sm:$0xff] }
 0x2d1   : > { %765 = vmatpush.bf16.msra.mxu0 %v1244_v58 }
 0x2d4   : > { %1205 = vmatmul.msk.bf16.vlgmr.msra.gmra.mxu0 %vm754_vm0, %v1243_v59 }
 0x2d5   : > { %834 = vperm.xlu1 (%p777_p8), %1304, %v809_v7   ;;  %817 = vperm.xlu0 (%p777_p8), %1303, %v809_v7  }
 0x2d7   : > { %851 = vperm.xlu2 (%p777_p8), %1305, %v809_v7  }
 0x2dd   : > { %1307 = vset.pattern.permute.xlu1 (%p777_p8), %v1346_v11  ;;  %1306 = vset.pattern.permute.xlu0 (%p777_p8), %v1346_v11 }
 0x2de   : > { %868 = vperm.xlu1 (%p777_p8), %1307, %v809_v7   ;;  %864 = vperm.xlu0 (%p777_p8), %1306, %v808_v3  }
 0x2df   : > { %1308 = vset.pattern.permute.xlu2 (%p777_p8), %v1347_v12 }
 0x2e0   : > { %881 = vperm.xlu2 (%p777_p8), %1308, %v808_v3  }
 0x2e6   : > { %1309 = vset.pattern.permute.xlu1 (%p777_p8), %v1347_v12  ;;  %1311 = vset.pattern.permute.xlu0 (%p777_p8), %v1348_v13 }
 0x2e7   : > { %885 = vperm.xlu1 (%p777_p8), %1309, %v809_v7   ;;  %902 = vperm.xlu0 (%p777_p8), %1311, %v809_v7  }
 0x2e8   : > { %1310 = vset.pattern.permute.xlu2 (%p777_p8), %v1348_v13 }
 0x2e9   : > { %898 = vperm.xlu2 (%p777_p8), %1310, %v808_v3  }
 0x2ef   : > { %1312 = vset.pattern.permute.xlu1 (%p777_p8), %v1349_v14  ;;  %1316 = vset.pattern.permute.xlu0 (%p777_p8), %v1350_v15 }
 0x2f0   : > { %915 = vperm.xlu1 (%p777_p8), %1312, %v808_v3  }
 0x2f1   : > { %1313 = vset.pattern.permute.xlu2 (%p777_p8), %v1349_v14 }
 0x2f2   : > { %919 = vperm.xlu2 (%p777_p8), %1313, %v809_v7  }
 0x2f8   : > { %1314 = vset.pattern.permute.xlu1 (%p777_p8), %v1350_v15 }
 0x2f9   : > { %932 = vperm.xlu1 (%p777_p8), %1314, %v808_v3  }
 0x2fa   : > { %1315 = vset.pattern.permute.xlu2 (%p777_p8), %v1350_v15 }
 0x2fb   : > { %936 = vperm.xlu2 (%p777_p8), %1315, %v809_v7  }
 0x329   : > { %v848_v16 = vpop.permute.xlu2 (%p777_p8), %847 }
 0x331   : > { %v852_v19 = vpop.permute.xlu2 (%p777_p8), %851 }
 0x33a   : > { %v882_v22 = vpop.permute.xlu2 (%p777_p8), %881 }
 0x33f   : > { %v831_v17 = vpop.permute.xlu1 (%p777_p8), %830  ;;  %v813_v18 = vpop.permute.xlu0 (%p777_p8), %812 }
 0x343   : > { %v899_v29 = vpop.permute.xlu2 (%p777_p8), %898 }
 0x347   : > { %v835_v20 = vpop.permute.xlu1 (%p777_p8), %834  ;;  %v818_v21 = vpop.permute.xlu0 (%p777_p8), %817 }
 0x34c   : > { %v920_v49 = vpop.permute.xlu2 (%p777_p8), %919 }
 0x350   : > { %v869_v23 = vpop.permute.xlu1 (%p777_p8), %868  ;;  %v865_v24 = vpop.permute.xlu0 (%p777_p8), %864 }
 0x351   : > { %v767_v61 = vpop.f32.mrf.mxu0 }
 0x352   : > { %v768_v62 = vadd.f32 %v1298_v60, %v767_v61 }
 0x354   : > { %1299 = vtanh.f32 %v768_v62 }
 0x359   : > { %v769_v63 = vpop.f32.mrf.mxu0  ;;  %v886_v39 = vpop.permute.xlu1 (%p777_p8), %885 }
 0x35a   : > { %v1300_v0 = vpop.eup %1299  ;;  %v770_v1 = vadd.f32 %v1298_v60, %v769_v63  ;;  %v903_v40 = vpop.permute.xlu0 (%p777_p8), %902 }
 0x35b   : > { %775 = vst [vmem:[#allocation3] sm:$0xff] %v1300_v0 }
 0x35c   : > { %1301 = vtanh.f32 %v770_v1 }
 0x35f   : > { %781 = sbr.rel (!%p777_p8) target bundleno = 1127 (0x467), region = 80 }
 0x362   : > { %v1302_v2 = vpop.eup %1301  ;;  %v1557_v9 = vld [vmem:[#allocation3] sm:$0xff] (%p777_p8)  ;;  %v916_v60 = vpop.permute.xlu1 (%p777_p8), %915 }
 0x363   : > { %776 = vst [vmem:[#allocation3 + $0x8] sm:$0xff] %v1302_v2  ;;  %v820_v26 = vadd.f32 (%p777_p8), %v813_v18, %v1557_v9  ;;  %v837_v28 = vadd.f32 (%p777_p8), %v831_v17, %v1557_v9  ;;  %v871_v33 = vadd.f32 (%p777_p8), %v865_v24, %v1557_v9  ;;  %v854_v34 = vadd.f32 (%p777_p8), %v848_v16, %v1557_v9 }
 0x364   : > { %v888_v37 = vadd.f32 %v882_v22, %v1557_v9  ;;  %v905_v38 = vadd.f32 %v899_v29, %v1557_v9  ;;  %v922_v63 = vadd.f32 %v916_v60, %v1557_v9 }
 0x36a   : > { %v1555_v8 = vld [vmem:[#allocation3 + $0x8] sm:$0xff] }
 0x36b   : > { %802 = vmatpush.msra.mxu0 %v1555_v8  ;;  %v838_v25 = vadd.f32 %v835_v20, %v1555_v8  ;;  %v821_v27 = vadd.f32 %v818_v21, %v1555_v8  ;;  %v872_v32 = vadd.f32 %v869_v23, %v1555_v8  ;;  %v855_v35 = vadd.f32 %v852_v19, %v1555_v8  ;;  %v933_v20 = vpop.permute.xlu1 %932 }
 0x36c   : > { %v889_v43 = vadd.f32 %v886_v39, %v1555_v8  ;;  %v906_v44 = vadd.f32 %v903_v40, %v1555_v8  ;;  %v923_v56 = vadd.f32 %v920_v49, %v1555_v8  ;;  %v939_v21 = vadd.f32 %v933_v20, %v1557_v9 }
 0x36d   : > { %803 = vmatpush.msra.mxu0 %v1557_v9  ;;  %v839_v30 = vmax.f32 %v837_v28, %v838_v25  ;;  %v822_v31 = vmax.f32 %v820_v26, %v821_v27  ;;  %v873_v42 = vmax.f32 %v871_v33, %v872_v32  ;;  %v856_v45 = vmax.f32 %v854_v34, %v855_v35 }
 0x36e   : > { %1207 = vmatmul.msk.f32.vlgmr.msra.gmra.mxu0 %vm754_vm0, %v784_v10  ;;  %v890_v46 = vmax.f32 %v888_v37, %v889_v43  ;;  %v907_v52 = vmax.f32 %v905_v38, %v906_v44  ;;  %v924_v1 = vmax.f32 %v922_v63, %v923_v56  ;;  %v937_v10 = vpop.permute.xlu2 %936 }
 0x36f   : > { %v840_v36 = vrot.slane %v839_v30, 4  ;;  %v823_v41 = vrot.slane %v822_v31, 4  ;;  %v874_v51 = vrot.slane %v873_v42, 4  ;;  %v857_v53 = vrot.slane %v856_v45, 4 }
 0x370   : > { %v891_v54 = vrot.slane %v890_v46, 4  ;;  %v908_v59 = vrot.slane %v907_v52, 4  ;;  %v925_v7 = vrot.slane %v924_v1, 4  ;;  %v940_v16 = vadd.f32 %v937_v10, %v1555_v8 }
 0x371   : > { %v841_v48 = vmax.f32 %v839_v30, %v840_v36  ;;  %v824_v50 = vmax.f32 %v822_v31, %v823_v41  ;;  %v875_v58 = vmax.f32 %v873_v42, %v874_v51  ;;  %v858_v61 = vmax.f32 %v856_v45, %v857_v53  ;;  %v1317_v42 = vld [vmem:[%s1616_s7 + $0x1] ss:$0 sm:$0xff]  ;;  %v1318_v45 = vld [vmem:[%s1616_s7] ss:$0 sm:$0xff] }
 0x372   : > { %v892_v62 = vmax.f32 %v890_v46, %v891_v54  ;;  %v909_v4 = vmax.f32 %v907_v52, %v908_v59  ;;  %v926_v12 = vmax.f32 %v924_v1, %v925_v7  ;;  %v941_v26 = vmax.f32 %v939_v21, %v940_v16 }
 0x373   : > { %v842_v55 = vrot.slane %v841_v48, 2  ;;  %v825_v57 = vrot.slane %v824_v50, 2  ;;  %v876_v3 = vrot.slane %v875_v58, 2  ;;  %v859_v5 = vrot.slane %v858_v61, 2 }
 0x374   : > { %v893_v6 = vrot.slane %v892_v62, 2  ;;  %v910_v15 = vrot.slane %v909_v4, 2  ;;  %v927_v19 = vrot.slane %v926_v12, 2  ;;  %v942_v30 = vrot.slane %v941_v26, 4 }
 0x375   : > { %v843_v0 = vmax.f32 %v841_v48, %v842_v55  ;;  %v826_v2 = vmax.f32 %v824_v50, %v825_v57  ;;  %v877_v14 = vmax.f32 %v875_v58, %v876_v3  ;;  %v860_v17 = vmax.f32 %v858_v61, %v859_v5 }
 0x376   : > { %v894_v18 = vmax.f32 %v892_v62, %v893_v6  ;;  %v911_v25 = vmax.f32 %v909_v4, %v910_v15  ;;  %v928_v29 = vmax.f32 %v926_v12, %v927_v19  ;;  %v943_v33 = vmax.f32 %v941_v26, %v942_v30 }
 0x377   : > { %v844_v11 = vrot.slane %v843_v0, 1  ;;  %v827_v13 = vrot.slane %v826_v2, 1  ;;  %v878_v24 = vrot.slane %v877_v14, 1  ;;  %v861_v27 = vrot.slane %v860_v17, 1 }
 0x378   : > { %v895_v28 = vrot.slane %v894_v18, 1  ;;  %v912_v8 = vrot.slane %v911_v25, 1  ;;  %v929_v36 = vrot.slane %v928_v29, 1  ;;  %v944_v9 = vrot.slane %v943_v33, 2 }
 0x379   : > { %v845_v22 = vmax.f32 %v843_v0, %v844_v11  ;;  %v828_v23 = vmax.f32 %v826_v2, %v827_v13  ;;  %v879_v32 = vmax.f32 %v877_v14, %v878_v24  ;;  %v862_v34 = vmax.f32 %v860_v17, %v861_v27 }
 0x37a   : > { %v896_v35 = vmax.f32 %v894_v18, %v895_v28  ;;  %v913_v39 = vmax.f32 %v911_v25, %v912_v8  ;;  %v945_v40 = vmax.f32 %v943_v33, %v944_v9  ;;  %v930_v41 = vmax.f32 %v928_v29, %v929_v36 }
 0x37b   : > { %v949_v31 = vsel %vm948_vm1, %v828_v23, %v845_v22  ;;  %v974_v54 = vstv %s973_s22 }
 0x37c   : > { %v951_v37 = vsel %vm950_vm2, %v949_v31, %v862_v34  ;;  %v946_v44 = vrot.slane %v945_v40, 1 }
 0x37d   : > { %v953_v38 = vsel %vm952_vm3, %v951_v37, %v879_v32 }
 0x37e   : > { %v955_v43 = vsel %vm954_vm4, %v953_v38, %v896_v35  ;;  %v947_v46 = vmax.f32 %v945_v40, %v946_v44 }
 0x37f   : > { %v957_v48 = vsel %vm956_vm5, %v955_v43, %v913_v39 }
 0x380   : > { %v959_v50 = vsel %vm958_vm6, %v957_v48, %v930_v41 }
 0x381   : > { %v961_v51 = vsel %vm960_vm7, %v959_v50, %v947_v46 }
 0x382   : > { %962 = vst [vmem:[%s1619_s10] sm:$0xff] %v961_v51  ;;  %v966_v52 = vmul.f32 %v1318_v45, %v961_v51 }
 0x3eb   : > { %v1577_v47 = vpop.f32.mrf.mxu0 }
 0x3ec   : > { %963 = vst [vmem:[%s1619_s10 + $0x8] sm:$0xff] %v1577_v47  ;;  %v969_v49 = vmul.f32 %v1317_v42, %v1577_v47 }
 0x3ee   : > { %v970_v53 = vadd.f32 %v969_v49, %v966_v52 }
 0x3f0   : > { %971 = vadd.xlane.f32.xlu0 %v970_v53 }
 0x463   : > { %v972_v55 = vpop.xlane.xlu0 %971 }
 0x464   : > { %v975_v56 = vadd.f32 %v974_v54, %v972_v55 }
 0x466   : > { %976 = vst [vmem:[%s1618_s9] sm:$0xff] %v975_v56 }
 0x467 PF: > { %s22_s17 = sadd.s32 1, %s1341_s17   ;;  %s1620_s15 = smov %s1337_s16 }
 0x468   : > { %p19_p9 = scmp.ge.s32.totalorder %s22_s17, 6   ;;  %s1621_s16 = smov %s1623_s8 }
 0x46a   :  { %21 = sbr.rel (!%p19_p9) target bundleno = 2 (0x2), region = 117 }

</bundles_post_ra>
